<compile_context>
chip_gen: v5e
topology: v5e:2x2
jax: 0.10.0
libtpu: 0.0.40
codegen_flags: <defaults>
</compile_context>

<pallas_src>
import math

import jax
import jax.numpy as jnp
from jax.experimental import pallas as pl
from jax.experimental.pallas import tpu as pltpu

IN_FEATURES = 5
HIDDEN = 512
OUT_FEATURES = 2
MAX_TILE_B = 512      # batch tile (lane axis); small enough for v7x's 64 MiB VMEM


def _round_up(n, m):
    return ((n + m - 1) // m) * m


def mlp_kernel(x_ref, w1_ref, b1_ref, w2_ref, b2_ref, out_ref):
    # x_ref:   (IN_FEATURES,  TILE_B)  bf16   -- batch on the lane axis
    # w1_ref:  (HIDDEN, IN_FEATURES)   bf16   -- PyTorch (out, in) layout as-is
    # b1_ref:  (HIDDEN, 1)             f32
    # w2_ref:  (OUT_FEATURES, HIDDEN)  bf16
    # b2_ref:  (OUT_FEATURES, 1)       f32
    # out_ref: (OUT_FEATURES, TILE_B)  f32    -- lane-dense stores
    h = jnp.dot(w1_ref[...], x_ref[...],
                preferred_element_type=jnp.float32)          # (512, TILE_B) f32
    h = jnp.maximum(h + b1_ref[...], 0.0)                    # bias + ReLU in f32
    o = jnp.dot(w2_ref[...], h.astype(jnp.bfloat16),
                preferred_element_type=jnp.float32)          # (2, TILE_B) f32
    out_ref[...] = jnp.maximum(o + b2_ref[...], 0.0)


def prepare_params(w1, b1, w2, b2):
    """One-time weight preprocessing, hoisted out of the forward hot path.
    Weights keep their PyTorch (out, in) layout; only cast + bias reshape."""
    w1_p = w1.astype(jnp.bfloat16)                           # (512, 5)
    w2_p = w2.astype(jnp.bfloat16)                           # (2, 512)
    b1_p = b1.reshape(HIDDEN, 1).astype(jnp.float32)         # (512, 1)
    b2_p = b2.reshape(OUT_FEATURES, 1).astype(jnp.float32)   # (2, 1)
    return w1_p, b1_p, w2_p, b2_p


def neural_network_forward(x, w1_p, b1_p, w2_p, b2_p):
    """x: (B, *) flattened to (B, 5).  Returns (B, 2) float32."""
    b = x.shape[0]
    x2d = x.reshape(b, -1)                                   # nn.Flatten()
    assert x2d.shape[1] == IN_FEATURES

    # Batch tile on the lane axis: multiple of 128, capped at MAX_TILE_B.
    tile_b = min(MAX_TILE_B, _round_up(max(b, 1), 128))
    b_pad = _round_up(b, tile_b)

    x_t = jnp.transpose(x2d).astype(jnp.bfloat16)            # (5, B)
    if b_pad != b:
        x_t = jnp.pad(x_t, ((0, 0), (0, b_pad - b)))         # (5, B_pad)

    grid = (b_pad // tile_b,)
    flops = 2 * b_pad * (IN_FEATURES * HIDDEN + HIDDEN * OUT_FEATURES)
    bytes_accessed = (x_t.size * 2 + w1_p.size * 2 + w2_p.size * 2
                      + b1_p.size * 4 + b2_p.size * 4
                      + OUT_FEATURES * b_pad * 4)

    out_t = pl.pallas_call(
        mlp_kernel,
        out_shape=jax.ShapeDtypeStruct((OUT_FEATURES, b_pad), jnp.float32),
        grid=grid,
        in_specs=[
            # Batch-tiled input; weights/biases have constant index_maps so
            # they stay resident in VMEM across all grid steps.
            pl.BlockSpec((IN_FEATURES, tile_b), lambda i: (0, i)),
            pl.BlockSpec((HIDDEN, IN_FEATURES), lambda i: (0, 0)),
            pl.BlockSpec((HIDDEN, 1), lambda i: (0, 0)),
            pl.BlockSpec((OUT_FEATURES, HIDDEN), lambda i: (0, 0)),
            pl.BlockSpec((OUT_FEATURES, 1), lambda i: (0, 0)),
        ],
        out_specs=pl.BlockSpec((OUT_FEATURES, tile_b), lambda i: (0, i)),
        compiler_params=pltpu.CompilerParams(
            dimension_semantics=("parallel",)),               # v7x: 2 TCs
        cost_estimate=pl.CostEstimate(
            flops=flops, transcendentals=0, bytes_accessed=bytes_accessed),
    )(x_t, w1_p, b1_p, w2_p, b2_p)

    return jnp.transpose(out_t[:, :b])                        # (B, 2) f32


def init_params(key):
    """PyTorch nn.Linear default init: U(-1/sqrt(fan_in), 1/sqrt(fan_in))."""
    k1, k2, k3, k4 = jax.random.split(key, 4)
    bound1 = 1.0 / math.sqrt(IN_FEATURES)
    bound2 = 1.0 / math.sqrt(HIDDEN)
    w1 = jax.random.uniform(k1, (HIDDEN, IN_FEATURES), jnp.float32,
                            minval=-bound1, maxval=bound1)
    b1 = jax.random.uniform(k2, (HIDDEN,), jnp.float32,
                            minval=-bound1, maxval=bound1)
    w2 = jax.random.uniform(k3, (OUT_FEATURES, HIDDEN), jnp.float32,
                            minval=-bound2, maxval=bound2)
    b2 = jax.random.uniform(k4, (OUT_FEATURES,), jnp.float32,
                            minval=-bound2, maxval=bound2)
    return w1, b1, w2, b2


def reference_forward(x, w1, b1, w2, b2):
    x2d = x.reshape(x.shape[0], -1)
    h = jnp.maximum(x2d @ w1.T + b1, 0.0)
    return jnp.maximum(h @ w2.T + b2, 0.0)


if __name__ == "__main__":
    key = jax.random.PRNGKey(0)
    k_params, k_x = jax.random.split(key)
    w1, b1, w2, b2 = init_params(k_params)
    w1_p, b1_p, w2_p, b2_p = prepare_params(w1, b1, w2, b2)

    batch = 8
    x = jax.random.normal(k_x, (batch, IN_FEATURES), jnp.float32)

    out = neural_network_forward(x, w1_p, b1_p, w2_p, b2_p)
    out = jax.block_until_ready(out)

    ref = reference_forward(x, w1, b1, w2, b2)                # full-f32 reference
    assert out.shape == (batch, OUT_FEATURES)
    # bf16 MXU inputs + f32 accumulation -> compare with bf16-level tolerance.
    assert jnp.allclose(out, ref, atol=2e-2, rtol=2e-2), "mismatch vs reference"

    print("KERNEL_OK")
</pallas_src>

<mosaic_0001>
module attributes {stable_mosaic.version = 11 : i64} {
  func.func @mlp_kernel(%arg0: i32, %arg1: memref<5x128xbf16, #tpu.memory_space<vmem>>, %arg2: memref<512x5xbf16, #tpu.memory_space<vmem>>, %arg3: memref<512x1xf32, #tpu.memory_space<vmem>>, %arg4: memref<2x512xbf16, #tpu.memory_space<vmem>>, %arg5: memref<2x1xf32, #tpu.memory_space<vmem>>, %arg6: memref<2x128xf32, #tpu.memory_space<vmem>>) attributes {dimension_semantics = [#tpu.dimension_semantics<parallel>], iteration_bounds = array<i64: 1>, scalar_prefetch = 0 : i64, scratch_operands = 0 : i64, tpu.core_type = #tpu.core_type<tc>, window_params = [{transform_indices = @transform_0, window_bounds = array<i64: 5, 128>}, {pipeline_mode = #tpu.pipeline_mode<synchronous>, transform_indices = @transform_1, window_bounds = array<i64: 512, 5>}, {pipeline_mode = #tpu.pipeline_mode<synchronous>, transform_indices = @transform_2, window_bounds = array<i64: 512, 1>}, {pipeline_mode = #tpu.pipeline_mode<synchronous>, transform_indices = @transform_3, window_bounds = array<i64: 2, 512>}, {pipeline_mode = #tpu.pipeline_mode<synchronous>, transform_indices = @transform_4, window_bounds = array<i64: 2, 1>}, {transform_indices = @transform_5, window_bounds = array<i64: 2, 128>}]} {
    %c0 = arith.constant 0 : index
    %c0_0 = arith.constant 0 : index
    %0 = vector.load %arg2[%c0, %c0_0] : memref<512x5xbf16, #tpu.memory_space<vmem>>, vector<512x5xbf16>
    %c0_1 = arith.constant 0 : index
    %c0_2 = arith.constant 0 : index
    %1 = vector.load %arg1[%c0_1, %c0_2] : memref<5x128xbf16, #tpu.memory_space<vmem>>, vector<5x128xbf16>
    %cst = arith.constant dense<0.000000e+00> : vector<512x128xf32>
    %2 = tpu.matmul %0, %1, %cst {dimension_numbers = #tpu.dot_dimension_numbers<[1], [0], [0], [1], [0, 0, 1, 1], [], []>} : vector<512x5xbf16>, vector<5x128xbf16>, vector<512x128xf32> -> vector<512x128xf32>
    %c0_3 = arith.constant 0 : index
    %c0_4 = arith.constant 0 : index
    %3 = vector.load %arg3[%c0_3, %c0_4] : memref<512x1xf32, #tpu.memory_space<vmem>>, vector<512x1xf32>
    %4 = vector.broadcast %3 : vector<512x1xf32> to vector<512x128xf32>
    %5 = arith.addf %2, %4 : vector<512x128xf32>
    %cst_5 = arith.constant 0.000000e+00 : f32
    %6 = vector.broadcast %cst_5 : f32 to vector<512x128xf32>
    %7 = arith.maximumf %5, %6 : vector<512x128xf32>
    %c0_6 = arith.constant 0 : index
    %c0_7 = arith.constant 0 : index
    %8 = vector.load %arg4[%c0_6, %c0_7] : memref<2x512xbf16, #tpu.memory_space<vmem>>, vector<2x512xbf16>
    %9 = arith.truncf %7 : vector<512x128xf32> to vector<512x128xbf16>
    %cst_8 = arith.constant dense<0.000000e+00> : vector<2x128xf32>
    %10 = tpu.matmul %8, %9, %cst_8 {dimension_numbers = #tpu.dot_dimension_numbers<[1], [0], [0], [1], [0, 0, 1, 1], [], []>} : vector<2x512xbf16>, vector<512x128xbf16>, vector<2x128xf32> -> vector<2x128xf32>
    %c0_9 = arith.constant 0 : index
    %c0_10 = arith.constant 0 : index
    %11 = vector.load %arg5[%c0_9, %c0_10] : memref<2x1xf32, #tpu.memory_space<vmem>>, vector<2x1xf32>
    %12 = vector.broadcast %11 : vector<2x1xf32> to vector<2x128xf32>
    %13 = arith.addf %10, %12 : vector<2x128xf32>
    %cst_11 = arith.constant 0.000000e+00 : f32
    %14 = vector.broadcast %cst_11 : f32 to vector<2x128xf32>
    %15 = arith.maximumf %13, %14 : vector<2x128xf32>
    %c0_12 = arith.constant 0 : index
    %c0_13 = arith.constant 0 : index
    %16 = vector.load %arg6[%c0_12, %c0_13] : memref<2x128xf32, #tpu.memory_space<vmem>>, vector<2x128xf32>
    tpu.vector_store %arg6[%c0_12, %c0_13], %15 {strides = array<i32>} : memref<2x128xf32, #tpu.memory_space<vmem>>, vector<2x128xf32>,
    return
  }
  func.func @transform_0(%arg0: i32) -> (i32, i32) {
    %c0_i32 = arith.constant 0 : i32
    %c0_i32_0 = arith.constant 0 : i32
    return %c0_i32, %arg0 : i32, i32
  }
  func.func @transform_1(%arg0: i32) -> (i32, i32) {
    %c0_i32 = arith.constant 0 : i32
    %c0_i32_0 = arith.constant 0 : i32
    %c0_i32_1 = arith.constant 0 : i32
    return %c0_i32, %c0_i32_0 : i32, i32
  }
  func.func @transform_2(%arg0: i32) -> (i32, i32) {
    %c0_i32 = arith.constant 0 : i32
    %c0_i32_0 = arith.constant 0 : i32
    %c0_i32_1 = arith.constant 0 : i32
    return %c0_i32, %c0_i32_0 : i32, i32
  }
  func.func @transform_3(%arg0: i32) -> (i32, i32) {
    %c0_i32 = arith.constant 0 : i32
    %c0_i32_0 = arith.constant 0 : i32
    %c0_i32_1 = arith.constant 0 : i32
    return %c0_i32, %c0_i32_0 : i32, i32
  }
  func.func @transform_4(%arg0: i32) -> (i32, i32) {
    %c0_i32 = arith.constant 0 : i32
    %c0_i32_0 = arith.constant 0 : i32
    %c0_i32_1 = arith.constant 0 : i32
    return %c0_i32, %c0_i32_0 : i32, i32
  }
  func.func @transform_5(%arg0: i32) -> (i32, i32) {
    %c0_i32 = arith.constant 0 : i32
    %c0_i32_0 = arith.constant 0 : i32
    return %c0_i32, %arg0 : i32, i32
  }
}

</mosaic_0001>

<bundles_post_ra>
// kernel: tpu_custom_call.1
= control target key start
LH: loop header
LB: loop body
LE: loop exit
PB: predicated region body
PF: predicated region fallthrough
CT: control target
= control target key end

     0   :  { %vm728_vm0 = vcmask 1041408   ;;  %vm729_vm1 = vcmask 1042432   ;;  %v1314_v3 = vmov 0   ;;  %v1315_v5 = vmov 65535   ;;  %s1907_s0 = inlined_call_operand.vmem [shape: bf16[5,128], index: 0, kind: input, shape index: {}]   ;;  %s1908_s1 = inlined_call_operand.vmem [shape: bf16[512,5], index: 1, kind: input, shape index: {}]   ;;  %s1909_s2 = inlined_call_operand.vmem [shape: f32[512,1], index: 2, kind: input, shape index: {}]   ;;  %s1910_s3 = inlined_call_operand.vmem [shape: bf16[2,512], index: 3, kind: input, shape index: {}]   ;;  %s1911_s4 = inlined_call_operand.vmem [shape: f32[2,1], index: 4, kind: input, shape index: {}]   ;;  %s1912_s5 = inlined_call_operand.hbm [shape: f32[2,128], index: 5, kind: output, shape index: {}]  }
   0x1   :  { %v91_v0 = vld [vmem:[%s1909_s2 + $0x20] sm:$0xff]  ;;  %v89_v1 = vld [vmem:[%s1909_s2 + $0x10] sm:$0xff]  ;;  %1287 = vset.pattern.permute.xlu2 %v1314_v3  ;;  %1286 = vset.pattern.permute.xlu1 %v1314_v3  ;;  %v730_v6 = vsel %vm728_vm0, 4294967295, %v1315_v5  ;;  %vm631_vm2 = vcmask 39936   ;;  %v1270_v11 = vld [vmem:[%s1908_s1 + $0xb8] sm:$0xff] }
   0x2   :  { %v87_v2 = vld [vmem:[%s1909_s2] sm:$0xff]  ;;  %1285 = vset.pattern.permute.xlu0 %v1314_v3  ;;  %173 = vperm.xlu2 %1287, %v91_v0   ;;  %v731_v7 = vsel %vm729_vm1, %v730_v6, 0  ;;  %v1261_v10 = vld [vmem:[%s1908_s1 + $0x70] sm:$0xff]  ;;  %v92_v12 = vld [vmem:[%s1909_s2 + $0x28] sm:$0xff] }
   0x3   :  { %v86_v4 = vld [vmem:[%s1907_s0] sm:$0x7]  ;;  %163 = vperm.xlu1 %1286, %v89_v1   ;;  %153 = vperm.xlu0 %1285, %v87_v2   ;;  %v90_v13 = vld [vmem:[%s1909_s2 + $0x18] sm:$0xff]  ;;  %v88_v14 = vld [vmem:[%s1909_s2 + $0x8] sm:$0xff] }
   0x4   :  { %v733_v8 = vand.u32 %v731_v7, %v86_v4  ;;  %v1247_v9 = vld [vmem:[%s1908_s1] sm:$0xff]  ;;  %v1258_v15 = vld [vmem:[%s1908_s1 + $0x58] sm:$0xff] }
   0x6   :  { %742 = vmatpush.bf16.msra.mxu0 %v733_v8  ;;  %1280 = vmatpush.bf16.msra.mxu2 %v733_v8 }
   0x7   :  { %1281 = vmatpush.bf16.msra.mxu3 %v733_v8  ;;  %1279 = vmatpush.bf16.msra.mxu1 %v733_v8 }
   0x8   :  { %10 = vsyncpa [#allocation3], 0  ;;  %v95_v16 = vld [vmem:[%s1909_s2 + $0x40] sm:$0xff]  ;;  %v94_v17 = vld [vmem:[%s1909_s2 + $0x38] sm:$0xff]  ;;  %s1078_s8 = sshll.u32 %s1912_s5, 4  ;;  %s1079_s8 = int_to_ptr.hbm [resolvable:$true] %s1078_s8 }
   0x9   :  { %1215 = vmatmul.msk.bf16.vlgmr.msra.gmra.mxu0 %vm631_vm2, %v1247_v9  ;;  %1229 = vmatmul.msk.bf16.vlgmr.msra.gmra.mxu2 %vm631_vm2, %v1261_v10  ;;  %v93_v18 = vld [vmem:[%s1909_s2 + $0x30] sm:$0xff]  ;;  %v1248_v19 = vld [vmem:[%s1908_s1 + $0x8] sm:$0xff]  ;;  %v1262_v20 = vld [vmem:[%s1908_s1 + $0x78] sm:$0xff] }
   0xa   :  { %1238 = vmatmul.msk.bf16.vlgmr.msra.gmra.mxu3 %vm631_vm2, %v1270_v11  ;;  %178 = vperm.xlu2 %1287, %v92_v12   ;;  %v1271_v21 = vld [vmem:[%s1908_s1 + $0xc0] sm:$0xff]  ;;  %v98_v22 = vld [vmem:[%s1909_s2 + $0x58] sm:$0xff]  ;;  %v97_v23 = vld [vmem:[%s1909_s2 + $0x50] sm:$0xff] }
   0xb   :  { %168 = vperm.xlu1 %1286, %v90_v13   ;;  %158 = vperm.xlu0 %1285, %v88_v14   ;;  %v96_v24 = vld [vmem:[%s1909_s2 + $0x48] sm:$0xff]  ;;  %v1259_v25 = vld [vmem:[%s1908_s1 + $0x60] sm:$0xff]  ;;  %v101_v26 = vld [vmem:[%s1909_s2 + $0x70] sm:$0xff] }
   0xc   :  { %1226 = vmatmul.msk.bf16.vlgmr.msra.gmra.mxu1 %vm631_vm2, %v1258_v15  ;;  %v100_v27 = vld [vmem:[%s1909_s2 + $0x68] sm:$0xff]  ;;  %v99_v28 = vld [vmem:[%s1909_s2 + $0x60] sm:$0xff]  ;;  %v1249_v29 = vld [vmem:[%s1908_s1 + $0x10] sm:$0xff] }
   0xd   :  { %v1263_v30 = vld [vmem:[%s1908_s1 + $0x80] sm:$0xff]  ;;  %v1272_v31 = vld [vmem:[%s1908_s1 + $0xc8] sm:$0xff]  ;;  %v102_v34 = vld [vmem:[%s1909_s2 + $0x78] sm:$0xff] }
   0xe   :  { %v104_v32 = vld [vmem:[%s1909_s2 + $0x88] sm:$0xff]  ;;  %v103_v33 = vld [vmem:[%s1909_s2 + $0x80] sm:$0xff]  ;;  %v106_v37 = vld [vmem:[%s1909_s2 + $0x98] sm:$0xff] }
   0xf   :  { %v1260_v35 = vld [vmem:[%s1908_s1 + $0x68] sm:$0xff]  ;;  %v107_v36 = vld [vmem:[%s1909_s2 + $0xa0] sm:$0xff]  ;;  %v105_v38 = vld [vmem:[%s1909_s2 + $0x90] sm:$0xff] }
  0x10   :  { %v1250_v39 = vld [vmem:[%s1908_s1 + $0x18] sm:$0xff]  ;;  %v1264_v40 = vld [vmem:[%s1908_s1 + $0x88] sm:$0xff]  ;;  %v1273_v41 = vld [vmem:[%s1908_s1 + $0xd0] sm:$0xff] }
  0x11   :  { %v110_v42 = vld [vmem:[%s1909_s2 + $0xb8] sm:$0xff]  ;;  %v109_v43 = vld [vmem:[%s1909_s2 + $0xb0] sm:$0xff]  ;;  %v108_v44 = vld [vmem:[%s1909_s2 + $0xa8] sm:$0xff] }
  0x12   :  { %193 = vperm.xlu2 %1287, %v95_v16   ;;  %v113_v45 = vld [vmem:[%s1909_s2 + $0xd0] sm:$0xff]  ;;  %v112_v46 = vld [vmem:[%s1909_s2 + $0xc8] sm:$0xff]  ;;  %v111_v47 = vld [vmem:[%s1909_s2 + $0xc0] sm:$0xff] }
  0x13   :  { %188 = vperm.xlu1 %1286, %v94_v17   ;;  %183 = vperm.xlu0 %1285, %v93_v18   ;;  %v1251_v48 = vld [vmem:[%s1908_s1 + $0x20] sm:$0xff]  ;;  %v1265_v49 = vld [vmem:[%s1908_s1 + $0x90] sm:$0xff]  ;;  %v1274_v50 = vld [vmem:[%s1908_s1 + $0xd8] sm:$0xff] }
  0x14   :  { %v117_v51 = vld [vmem:[%s1909_s2 + $0xf0] sm:$0xff]  ;;  %v115_v52 = vld [vmem:[%s1909_s2 + $0xe0] sm:$0xff]  ;;  %v114_v53 = vld [vmem:[%s1909_s2 + $0xd8] sm:$0xff] }
  0x15   :  { %v134_v54 = vld [vmem:[%s1909_s2 + $0x178] sm:$0xff]  ;;  %v133_v55 = vld [vmem:[%s1909_s2 + $0x170] sm:$0xff]  ;;  %v1252_v57 = vld [vmem:[%s1908_s1 + $0x28] sm:$0xff] }
  0x16   :  { %v118_v56 = vld [vmem:[%s1909_s2 + $0xf8] sm:$0xff]  ;;  %v1275_v59 = vld [vmem:[%s1908_s1 + $0xe0] sm:$0xff]  ;;  %v132_v60 = vld [vmem:[%s1909_s2 + $0x168] sm:$0xff] }
  0x17   :  { %v1266_v58 = vld [vmem:[%s1908_s1 + $0x98] sm:$0xff]  ;;  %v131_v61 = vld [vmem:[%s1909_s2 + $0x160] sm:$0xff]  ;;  %v116_v62 = vld [vmem:[%s1909_s2 + $0xe8] sm:$0xff] }
  0x18   :  { %v129_v0 = vld [vmem:[%s1909_s2 + $0x150] sm:$0xff]  ;;  %v150_v1 = vld [vmem:[%s1909_s2 + $0x1f8] sm:$0xff]  ;;  %v1267_v5 = vld [vmem:[%s1908_s1 + $0xa0] sm:$0xff] }
  0x19   :  { %1216 = vmatmul.msk.bf16.gmra.mxu0 %vm631_vm2, %v1248_v19  ;;  %1230 = vmatmul.msk.bf16.gmra.mxu2 %vm631_vm2, %v1262_v20  ;;  %v149_v2 = vld [vmem:[%s1909_s2 + $0x1f0] sm:$0xff]  ;;  %v1276_v6 = vld [vmem:[%s1908_s1 + $0xe8] sm:$0xff]  ;;  %v147_v8 = vld [vmem:[%s1909_s2 + $0x1e0] sm:$0xff] }
  0x1a   :  { %1239 = vmatmul.msk.bf16.gmra.mxu3 %vm631_vm2, %v1271_v21  ;;  %208 = vperm.xlu2 %1287, %v98_v22   ;;  %v1253_v4 = vld [vmem:[%s1908_s1 + $0x30] sm:$0xff]  ;;  %v148_v7 = vld [vmem:[%s1909_s2 + $0x1e8] sm:$0xff]  ;;  %v130_v9 = vld [vmem:[%s1909_s2 + $0x158] sm:$0xff] }
  0x1b   :  { %203 = vperm.xlu1 %1286, %v97_v23   ;;  %198 = vperm.xlu0 %1285, %v96_v24   ;;  %v145_v11 = vld [vmem:[%s1909_s2 + $0x1d0] sm:$0xff]  ;;  %v128_v12 = vld [vmem:[%s1909_s2 + $0x148] sm:$0xff]  ;;  %v127_v13 = vld [vmem:[%s1909_s2 + $0x140] sm:$0xff] }
  0x1c   :  { %1227 = vmatmul.msk.bf16.gmra.mxu1 %vm631_vm2, %v1259_v25  ;;  %v1254_v17 = vld [vmem:[%s1908_s1 + $0x38] sm:$0xff]  ;;  %v1268_v18 = vld [vmem:[%s1908_s1 + $0xa8] sm:$0xff]  ;;  %v1277_v19 = vld [vmem:[%s1908_s1 + $0xf0] sm:$0xff] }
  0x1d   :  { %v126_v20 = vld [vmem:[%s1909_s2 + $0x138] sm:$0xff]  ;;  %v125_v21 = vld [vmem:[%s1909_s2 + $0x130] sm:$0xff] }
  0x1e   :  { %v146_v22 = vld [vmem:[%s1909_s2 + $0x1d8] sm:$0xff] }
  0x22   :  { %223 = vperm.xlu2 %1287, %v101_v26   ;;  %v123_v26 = vld [vmem:[%s1909_s2 + $0x120] sm:$0xff] }
  0x23   :  { %218 = vperm.xlu1 %1286, %v100_v27   ;;  %213 = vperm.xlu0 %1285, %v99_v28   ;;  %v144_v27 = vld [vmem:[%s1909_s2 + $0x1c8] sm:$0xff]  ;;  %v143_v28 = vld [vmem:[%s1909_s2 + $0x1c0] sm:$0xff] }
  0x29   :  { %1217 = vmatmul.msk.bf16.gmra.mxu0 %vm631_vm2, %v1249_v29  ;;  %1231 = vmatmul.msk.bf16.gmra.mxu2 %vm631_vm2, %v1263_v30 }
  0x2a   :  { %1240 = vmatmul.msk.bf16.gmra.mxu3 %vm631_vm2, %v1272_v31  ;;  %238 = vperm.xlu2 %1287, %v104_v32   ;;  %v1255_v32 = vld [vmem:[%s1908_s1 + $0x40] sm:$0xff] }
  0x2b   :  { %233 = vperm.xlu1 %1286, %v103_v33   ;;  %228 = vperm.xlu0 %1285, %v102_v34   ;;  %v1269_v33 = vld [vmem:[%s1908_s1 + $0xb0] sm:$0xff] }
  0x2c   :  { %1228 = vmatmul.msk.bf16.gmra.mxu1 %vm631_vm2, %v1260_v35  ;;  %v1278_v35 = vld [vmem:[%s1908_s1 + $0xf8] sm:$0xff] }
  0x32   :  { %253 = vperm.xlu2 %1287, %v107_v36  }
  0x33   :  { %248 = vperm.xlu1 %1286, %v106_v37   ;;  %243 = vperm.xlu0 %1285, %v105_v38   ;;  %v142_v37 = vld [vmem:[%s1909_s2 + $0x1b8] sm:$0xff]  ;;  %v141_v38 = vld [vmem:[%s1909_s2 + $0x1b0] sm:$0xff] }
  0x39   :  { %1218 = vmatmul.msk.bf16.gmra.mxu0 %vm631_vm2, %v1250_v39  ;;  %1232 = vmatmul.msk.bf16.gmra.mxu2 %vm631_vm2, %v1264_v40  ;;  %v124_v39 = vld [vmem:[%s1909_s2 + $0x128] sm:$0xff] }
  0x3a   :  { %1241 = vmatmul.msk.bf16.gmra.mxu3 %vm631_vm2, %v1273_v41  ;;  %268 = vperm.xlu2 %1287, %v110_v42  }
  0x3b   :  { %263 = vperm.xlu1 %1286, %v109_v43   ;;  %258 = vperm.xlu0 %1285, %v108_v44  }
  0x42   :  { %283 = vperm.xlu2 %1287, %v113_v45  }
  0x43   :  { %278 = vperm.xlu1 %1286, %v112_v46   ;;  %273 = vperm.xlu0 %1285, %v111_v47   ;;  %v139_v47 = vld [vmem:[%s1909_s2 + $0x1a0] sm:$0xff] }
  0x49   :  { %1219 = vmatmul.msk.bf16.gmra.mxu0 %vm631_vm2, %v1251_v48  ;;  %1233 = vmatmul.msk.bf16.gmra.mxu2 %vm631_vm2, %v1265_v49  ;;  %v122_v48 = vld [vmem:[%s1909_s2 + $0x118] sm:$0xff]  ;;  %v121_v49 = vld [vmem:[%s1909_s2 + $0x110] sm:$0xff] }
  0x4a   :  { %1242 = vmatmul.msk.bf16.gmra.mxu3 %vm631_vm2, %v1274_v50  ;;  %303 = vperm.xlu2 %1287, %v117_v51  }
  0x4b   :  { %293 = vperm.xlu1 %1286, %v115_v52   ;;  %288 = vperm.xlu0 %1285, %v114_v53  }
  0x52   :  { %388 = vperm.xlu2 %1287, %v134_v54  }
  0x53   :  { %383 = vperm.xlu1 %1286, %v133_v55   ;;  %308 = vperm.xlu0 %1285, %v118_v56  }
  0x59   :  { %1220 = vmatmul.msk.bf16.gmra.mxu0 %vm631_vm2, %v1252_v57  ;;  %1234 = vmatmul.msk.bf16.gmra.mxu2 %vm631_vm2, %v1266_v58  ;;  %v1256_v57 = vld [vmem:[%s1908_s1 + $0x48] sm:$0xff] }
  0x5a   :  { %1243 = vmatmul.msk.bf16.gmra.mxu3 %vm631_vm2, %v1275_v59  ;;  %378 = vperm.xlu2 %1287, %v132_v60  }
  0x5b   :  { %373 = vperm.xlu1 %1286, %v131_v61   ;;  %298 = vperm.xlu0 %1285, %v116_v62   ;;  %v120_v61 = vld [vmem:[%s1909_s2 + $0x108] sm:$0xff]  ;;  %v119_v62 = vld [vmem:[%s1909_s2 + $0x100] sm:$0xff] }
  0x5c   :  { %v1542_v63 = vpop.permute.xlu2 %173 }
  0x62   :  { %363 = vperm.xlu2 %1287, %v129_v0   ;;  %v140_v0 = vld [vmem:[%s1909_s2 + $0x1a8] sm:$0xff] }
  0x63   :  { %468 = vperm.xlu1 %1286, %v150_v1   ;;  %463 = vperm.xlu0 %1285, %v149_v2  }
  0x64   :  { %v1553_v3 = vpop.permute.xlu2 %178 }
  0x69   :  { %1221 = vmatmul.msk.bf16.gmra.mxu0 %vm631_vm2, %v1253_v4  ;;  %1235 = vmatmul.msk.bf16.gmra.mxu2 %vm631_vm2, %v1267_v5 }
  0x6a   :  { %1244 = vmatmul.msk.bf16.gmra.mxu3 %vm631_vm2, %v1276_v6  ;;  %458 = vperm.xlu2 %1287, %v148_v7  }
  0x6b   :  { %453 = vperm.xlu1 %1286, %v147_v8   ;;  %368 = vperm.xlu0 %1285, %v130_v9  }
  0x6c   :  { %v1576_v10 = vpop.permute.xlu2 %193 }
  0x72   :  { %443 = vperm.xlu2 %1287, %v145_v11   ;;  %v135_v11 = vld [vmem:[%s1909_s2 + $0x180] sm:$0xff] }
  0x73   :  { %358 = vperm.xlu1 %1286, %v128_v12   ;;  %353 = vperm.xlu0 %1285, %v127_v13   ;;  %v138_v12 = vld [vmem:[%s1909_s2 + $0x198] sm:$0xff]  ;;  %v137_v13 = vld [vmem:[%s1909_s2 + $0x190] sm:$0xff] }
  0x74   :  { %v1587_v14 = vpop.permute.xlu2 %208 }
  0x75   :  { %v1589_v15 = vpop.permute.xlu1 %163  ;;  %v154_v16 = vpop.permute.xlu0 %153 }
  0x79   :  { %1222 = vmatmul.msk.bf16.gmra.mxu0 %vm631_vm2, %v1254_v17  ;;  %1236 = vmatmul.msk.bf16.gmra.mxu2 %vm631_vm2, %v1268_v18 }
  0x7a   :  { %1245 = vmatmul.msk.bf16.gmra.mxu3 %vm631_vm2, %v1277_v19  ;;  %348 = vperm.xlu2 %1287, %v126_v20  }
  0x7b   :  { %343 = vperm.xlu1 %1286, %v125_v21   ;;  %448 = vperm.xlu0 %1285, %v146_v22  }
  0x7c   :  { %v1612_v23 = vpop.permute.xlu2 %223 }
  0x7d   :  { %v1614_v24 = vpop.permute.xlu1 %168  ;;  %v159_v25 = vpop.permute.xlu0 %158 }
  0x82   :  { %333 = vperm.xlu2 %1287, %v123_v26  }
  0x83   :  { %438 = vperm.xlu1 %1286, %v144_v27   ;;  %433 = vperm.xlu0 %1285, %v143_v28   ;;  %v1001_v27 = vld [vmem:[%s1911_s4] sm:$0x3]  ;;  %v136_v28 = vld [vmem:[%s1909_s2 + $0x188] sm:$0xff] }
  0x84   :  { %v1625_v29 = vpop.permute.xlu2 %238 }
  0x85   :  { %1913 = vst [vmem:[#allocation5_spill] sm:$0xff] %v1625_v29  ;;  %v1627_v30 = vpop.permute.xlu1 %188  ;;  %v1629_v31 = vpop.permute.xlu0 %183 }
  0x86   :  { %v744_v34 = vpop.f32.mrf.mxu0 }
  0x87   :  { %v745_v36 = vadd.f32 %v744_v34, %v154_v16 }
  0x89   :  { %1223 = vmatmul.msk.bf16.gmra.mxu0 %vm631_vm2, %v1255_v32  ;;  %1237 = vmatmul.msk.bf16.gmra.mxu2 %vm631_vm2, %v1269_v33  ;;  %v904_v50 = vmax.f32 %v745_v36, 0.0  ;;  %v1696_v1 = vpop.f32.mrf.mxu1 }
  0x8a   :  { %1246 = vmatmul.msk.bf16.gmra.mxu3 %vm631_vm2, %v1278_v35  ;;  %428 = vperm.xlu2 %1287, %v142_v37  }
  0x8b   :  { %423 = vperm.xlu1 %1286, %v141_v38   ;;  %338 = vperm.xlu0 %1285, %v124_v39  }
  0x8c   :  { %v1652_v40 = vpop.f32.mrf.mxu2  ;;  %v1654_v41 = vpop.permute.xlu2 %253 }
  0x8d   :  { %1914 = vst [vmem:[#allocation6_spill] sm:$0xff] %v1654_v41  ;;  %v1656_v42 = vpop.f32.mrf.mxu3  ;;  %v1658_v43 = vpop.permute.xlu1 %203 }
  0x8e   :  { %v1660_v44 = vpop.permute.xlu0 %198  ;;  %v746_v45 = vpop.f32.mrf.mxu0 }
  0x8f   :  { %v747_v46 = vadd.f32 %v746_v45, %v159_v25 }
  0x91   :  { %v905_v51 = vmax.f32 %v747_v46, 0.0  ;;  %v1717_v17 = vpop.f32.mrf.mxu1 }
  0x92   :  { %413 = vperm.xlu2 %1287, %v139_v47  }
  0x93   :  { %328 = vperm.xlu1 %1286, %v122_v48   ;;  %323 = vperm.xlu0 %1285, %v121_v49   ;;  %v1671_v52 = vpack.c.bf16 %v905_v51, %v904_v50 }
  0x94   :  { %v1673_v53 = vpop.f32.mrf.mxu2  ;;  %v1675_v54 = vpop.permute.xlu2 %268 }
  0x95   :  { %v1677_v55 = vpop.f32.mrf.mxu3  ;;  %v1679_v56 = vpop.permute.xlu1 %218 }
  0x96   :  { %v1684_v58 = vpop.permute.xlu0 %213  ;;  %v749_v59 = vpop.f32.mrf.mxu0 }
  0x97   :  { %v750_v60 = vadd.f32 %v749_v59, %v1589_v15 }
  0x99   :  { %1224 = vmatmul.msk.bf16.gmra.mxu0 %vm631_vm2, %v1256_v57  ;;  %v906_v15 = vmax.f32 %v750_v60, 0.0  ;;  %v804_v38 = vpop.f32.mrf.mxu1 }
  0x9a   :  { %318 = vperm.xlu2 %1287, %v120_v61  }
  0x9b   :  { %313 = vperm.xlu1 %1286, %v119_v62   ;;  %418 = vperm.xlu0 %1285, %v140_v0  }
  0x9c   :  { %v819_v2 = vpop.f32.mrf.mxu2  ;;  %v1699_v4 = vpop.permute.xlu2 %283 }
  0x9d   :  { %v1701_v5 = vpop.f32.mrf.mxu3  ;;  %v1703_v6 = vpop.permute.xlu1 %233 }
  0x9e   :  { %1915 = vst [vmem:[#allocation7_spill] sm:$0xff] %v1701_v5  ;;  %v1705_v7 = vpop.permute.xlu0 %228  ;;  %v751_v8 = vpop.f32.mrf.mxu0 }
  0x9f   :  { %1916 = vst [vmem:[#allocation8_spill] sm:$0xff] %v1703_v6  ;;  %v752_v9 = vadd.f32 %v751_v8, %v1614_v24  ;;  %v1257_v24 = vld [vmem:[%s1908_s1 + $0x50] sm:$0xff] }
  0xa1   :  { %v907_v16 = vmax.f32 %v752_v9, 0.0  ;;  %v806_v60 = vpop.f32.mrf.mxu1 }
  0xa2   :  { %393 = vperm.xlu2 %1287, %v135_v11  }
  0xa3   :  { %408 = vperm.xlu1 %1286, %v138_v12   ;;  %403 = vperm.xlu0 %1285, %v137_v13   ;;  %v1719_v18 = vpack.c.bf16 %v907_v16, %v906_v15 }
  0xa4   :  { %v821_v19 = vpop.f32.mrf.mxu2  ;;  %v304_v20 = vpop.permute.xlu2 %303 }
  0xa5   :  { %v1721_v21 = vpop.f32.mrf.mxu3  ;;  %v1723_v22 = vpop.permute.xlu1 %248 }
  0xa6   :  { %1917 = vst [vmem:[#allocation9_spill] sm:$0xff] %v1721_v21  ;;  %v1728_v25 = vpop.permute.xlu0 %243  ;;  %v754_v26 = vpop.f32.mrf.mxu0 }
  0xa7   :  { %1918 = vst [vmem:[#allocation10_spill] sm:$0xff] %v1723_v22  ;;  %v755_v33 = vadd.f32 %v754_v26, %v1542_v63 }
  0xa8   :  { %1919 = vst [vmem:[#allocation11_spill] sm:$0xff] %v1728_v25 }
  0xa9   :  { %1225 = vmatmul.msk.bf16.gmra.mxu0 %vm631_vm2, %v1257_v24  ;;  %v908_v46 = vmax.f32 %v755_v33, 0.0  ;;  %v809_v15 = vpop.f32.mrf.mxu1 }
  0xab   :  { %1004 = vperm.xlu1 %1286, %v1001_v27   ;;  %398 = vperm.xlu0 %1285, %v136_v28   ;;  %v820_v27 = vadd.f32 %v819_v2, %v304_v20 }
  0xac   :  { %v1737_v32 = vpop.f32.mrf.mxu2  ;;  %v389_v45 = vpop.permute.xlu2 %388 }
  0xad   :  { %1920 = vst [vmem:[#allocation12_spill] sm:$0xff] %v1737_v32  ;;  %v1740_v34 = vpop.f32.mrf.mxu3  ;;  %v1742_v35 = vpop.permute.xlu1 %263  ;;  %v862_v24 = vadd.f32 %v1677_v55, %v389_v45 }
  0xae   :  { %1921 = vst [vmem:[#allocation13_spill] sm:$0xff] %v1740_v34  ;;  %v1744_v36 = vpop.permute.xlu0 %258  ;;  %v756_v37 = vpop.f32.mrf.mxu0 }
  0xaf   :  { %1922 = vst [vmem:[#allocation14_spill] sm:$0xff] %v1744_v36  ;;  %v757_v39 = vadd.f32 %v756_v37, %v1553_v3  ;;  %v968_v36 = vld [vmem:[%s1910_s3] sm:$0xf]  ;;  %s1316_s3 = smov [#allocation2]  }
  0xb0   :  { %1008 = vst [vmem:[#allocation1] ss:$9 sm:$0xff] %v968_v36  ;;  %s1076_s4 = sshll.u32 %s1316_s3, 4  ;;  %s1077_s4 = int_to_ptr.vmem [resolvable:$true] %s1076_s4 }
  0xb1   :  { %v909_v47 = vmax.f32 %v757_v39, 0.0  ;;  %v811_v55 = vpop.f32.mrf.mxu1 }
  0xb3   :  { %v1747_v48 = vpack.c.bf16 %v909_v47, %v908_v46  ;;  %v951_v47 = vmax.f32 %v862_v24, 0.0 }
  0xb4   :  { %v1749_v49 = vpop.f32.mrf.mxu2  ;;  %v1754_v61 = vpop.permute.xlu2 %378 }
  0xb5   :  { %1923 = vst [vmem:[#allocation15_spill] sm:$0xff] %v1749_v49  ;;  %v1751_v50 = vpop.f32.mrf.mxu3  ;;  %v279_v63 = vpop.permute.xlu1 %278 }
  0xb6   :  { %1924 = vst [vmem:[#allocation16_spill] sm:$0xff] %v1751_v50  ;;  %v274_v51 = vpop.permute.xlu0 %273  ;;  %v759_v57 = vpop.f32.mrf.mxu0 }
  0xb7   :  { %v760_v59 = vadd.f32 %v759_v57, %v1629_v31 }
  0xb9   :  { %v910_v12 = vmax.f32 %v760_v59, 0.0  ;;  %v934_v59 = vmax.f32 %v820_v27, 0.0 }
  0xbc   :  { %v1756_v62 = vpop.f32.mrf.mxu2  ;;  %v1764_v31 = vpop.permute.xlu2 %363 }
  0xbd   :  { %1925 = vst [vmem:[#allocation17_spill] sm:$0xff] %v1756_v62  ;;  %v1758_v3 = vpop.f32.mrf.mxu3  ;;  %v294_v0 = vpop.permute.xlu1 %293 }
  0xbe   :  { %1926 = vst [vmem:[#allocation18_spill] sm:$0xff] %v1758_v3  ;;  %v289_v8 = vpop.permute.xlu0 %288  ;;  %v761_v9 = vpop.f32.mrf.mxu0  ;;  %v815_v2 = vadd.f32 %v1652_v40, %v294_v0 }
  0xbf   :  { %v762_v11 = vadd.f32 %v761_v9, %v1627_v30 }
  0xc1   :  { %v911_v13 = vmax.f32 %v762_v11, 0.0 }
  0xc3   :  { %v1761_v16 = vpack.c.bf16 %v911_v13, %v910_v12 }
  0xc4   :  { %v1766_v26 = vpop.f32.mrf.mxu2 }
  0xc5   :  { %v1768_v28 = vpop.f32.mrf.mxu3  ;;  %v384_v33 = vpop.permute.xlu1 %383 }
  0xc6   :  { %1927 = vst [vmem:[#allocation19_spill] sm:$0xff] %v1768_v28  ;;  %v860_v37 = vadd.f32 %v1656_v42, %v384_v33  ;;  %v309_v39 = vpop.permute.xlu0 %308  ;;  %v764_v46 = vpop.f32.mrf.mxu0  ;;  %v812_v33 = vadd.f32 %v811_v55, %v289_v8 }
  0xc7   :  { %v822_v30 = vadd.f32 %v821_v19, %v309_v39  ;;  %v765_v20 = vadd.f32 %v764_v46, %v1576_v10  ;;  %v810_v39 = vadd.f32 %v809_v15, %v1699_v4  ;;  %v807_v46 = vadd.f32 %v806_v60, %v279_v63 }
  0xc8   :  { %v950_v57 = vmax.f32 %v860_v37, 0.0  ;;  %v800_v15 = vadd.f32 %v1696_v1, %v1742_v35 }
  0xc9   :  { %v935_v9 = vmax.f32 %v822_v30, 0.0  ;;  %v1782_v30 = vpop.permute.xlu2 %458  ;;  %v912_v40 = vmax.f32 %v765_v20, 0.0  ;;  %v930_v8 = vmax.f32 %v810_v39, 0.0 }
  0xca   :  { %v992_v11 = vpack.c.bf16 %v951_v47, %v950_v57  ;;  %v932_v47 = vmax.f32 %v815_v2, 0.0  ;;  %v805_v57 = vadd.f32 %v804_v38, %v274_v51  ;;  %v929_v2 = vmax.f32 %v807_v46, 0.0 }
  0xcb   :  { %v984_v12 = vpack.c.bf16 %v935_v9, %v934_v59  ;;  %v931_v59 = vmax.f32 %v812_v33, 0.0  ;;  %v802_v51 = vadd.f32 %v1717_v17, %v1675_v54  ;;  %v926_v20 = vmax.f32 %v800_v15, 0.0 }
  0xcc   :  { %v1771_v45 = vpop.f32.mrf.mxu2  ;;  %1043 = vmatpush.bf16.msrb.mxu3 %v992_v11  ;;  %v928_v63 = vmax.f32 %v805_v57, 0.0 }
  0xcd   :  { %v1775_v13 = vpop.f32.mrf.mxu3  ;;  %1030 = vmatpush.bf16.msrb.mxu2 %v984_v12  ;;  %v1777_v42 = vpop.permute.xlu1 %373  ;;  %v982_v38 = vpack.c.bf16 %v931_v59, %v930_v8  ;;  %v927_v33 = vmax.f32 %v802_v51, 0.0 }
  0xce   :  { %v299_v19 = vpop.permute.xlu0 %298  ;;  %v766_v24 = vpop.f32.mrf.mxu0 }
  0xcf   :  { %v817_v27 = vadd.f32 %v1673_v53, %v299_v19  ;;  %v767_v37 = vadd.f32 %v766_v24, %v1660_v44  ;;  %v981_v19 = vpack.c.bf16 %v929_v2, %v928_v63  ;;  %v980_v39 = vpack.c.bf16 %v927_v33, %v926_v20 }
  0xd1   :  { %v933_v0 = vmax.f32 %v817_v27, 0.0  ;;  %v913_v10 = vmax.f32 %v767_v37, 0.0  ;;  %v1796_v60 = vpop.permute.xlu2 %443 }
  0xd3   :  { %v983_v9 = vpack.c.bf16 %v933_v0, %v932_v47  ;;  %v1784_v11 = vpack.c.bf16 %v913_v10, %v912_v40 }
  0xd4   :  { %v836_v12 = vpop.f32.mrf.mxu2 }
  0xd5   :  { %v881_v55 = vpop.f32.mrf.mxu3  ;;  %1031 = vmatpush.bf16.msrb.mxu2 %v983_v9  ;;  %v1786_v53 = vpop.permute.xlu1 %468 }
  0xd6   :  { %v1788_v44 = vpop.permute.xlu0 %463  ;;  %v1790_v4 = vpop.f32.mrf.mxu0 }
  0xd9   :  { %1032 = vmatpush.bf16.msrb.mxu2 %v982_v38  ;;  %v1806_v47 = vpop.permute.xlu2 %348 }
  0xdc   :  { %v1798_v24 = vpop.f32.mrf.mxu2 }
  0xdd   :  { %v1800_v27 = vpop.f32.mrf.mxu3  ;;  %1033 = vmatpush.bf16.msrb.mxu2 %v981_v19  ;;  %v1802_v37 = vpop.permute.xlu1 %453 }
  0xde   :  { %v1804_v1 = vpop.permute.xlu0 %368  ;;  %v771_v35 = vpop.f32.mrf.mxu0 }
  0xdf   :  { %v772_v28 = vadd.f32 %v771_v35, %v1587_v14 }
  0xe1   :  { %1034 = vmatpush.bf16.msrb.mxu2 %v980_v39  ;;  %v334_v15 = vpop.permute.xlu2 %333 }
  0xe2   :  { %v835_v33 = vadd.f32 %v1771_v45, %v334_v15 }
  0xe4   :  { %v1808_v54 = vpop.f32.mrf.mxu2 }
  0xe5   :  { %v1810_v17 = vpop.f32.mrf.mxu3  ;;  %v1812_v40 = vpop.permute.xlu1 %358 }
  0xe6   :  { %v1814_v0 = vpop.permute.xlu0 %353  ;;  %v774_v10 = vpop.f32.mrf.mxu0 }
  0xe9   :  { %v429_v19 = vpop.permute.xlu2 %428 }
  0xea   :  { %v882_v39 = vadd.f32 %v881_v55, %v429_v19  ;;  %v940_v55 = vmax.f32 %v835_v33, 0.0 }
  0xec   :  { %v1816_v46 = vpop.f32.mrf.mxu2  ;;  %v959_v15 = vmax.f32 %v882_v39, 0.0 }
  0xed   :  { %v1818_v57 = vpop.f32.mrf.mxu3  ;;  %v1820_v59 = vpop.permute.xlu1 %343 }
  0xee   :  { %v1822_v9 = vpop.permute.xlu0 %448  ;;  %v776_v8 = vpop.f32.mrf.mxu0 }
  0xef   :  { %v777_v22 = vadd.f32 %v776_v8, %v1679_v56 }
  0xf1   :  { %v917_v49 = vmax.f32 %v777_v22, 0.0 }
  0xf4   :  { %v846_v2 = vpop.f32.mrf.mxu2 }
  0xf5   :  { %v1824_v63 = vpop.f32.mrf.mxu3  ;;  %v1826_v38 = vpop.permute.xlu1 %438 }
  0xf6   :  { %v1828_v51 = vpop.permute.xlu0 %433  ;;  %v779_v20 = vpop.f32.mrf.mxu0 }
  0xf7   :  { %v780_v6 = vadd.f32 %v779_v20, %v1612_v23  ;;  %v775_v20 = vadd.f32 %v774_v10, %v1684_v58  ;;  %v915_v58 = vmax.f32 %v772_v28, 0.0 }
  0xf9   :  { %v918_v19 = vmax.f32 %v780_v6, 0.0 }
  0xfc   :  { %v849_v5 = vpop.f32.mrf.mxu2 }
  0xfd   :  { %v1832_v21 = vpop.f32.mrf.mxu3  ;;  %v424_v29 = vpop.permute.xlu1 %423  ;;  %v850_v10 = vadd.f32 %v849_v5, %v1764_v31 }
  0xfe   :  { %v880_v25 = vadd.f32 %v1775_v13, %v424_v29  ;;  %v339_v34 = vpop.permute.xlu0 %338  ;;  %v781_v50 = vpop.f32.mrf.mxu0 }
  0xff   :  { %v837_v3 = vadd.f32 %v836_v12, %v339_v34  ;;  %v782_v45 = vadd.f32 %v781_v50, %v1705_v7  ;;  %v770_v7 = vadd.f32 %v1790_v4, %v1658_v43  ;;  %v916_v34 = vmax.f32 %v775_v20, 0.0 }
 0x100   :  { %v958_v23 = vmax.f32 %v880_v25, 0.0 }
 0x101   :  { %v941_v41 = vmax.f32 %v837_v3, 0.0  ;;  %v919_v29 = vmax.f32 %v782_v45, 0.0  ;;  %v975_v6 = vpack.c.bf16 %v917_v49, %v916_v34  ;;  %v914_v50 = vmax.f32 %v770_v7, 0.0  ;;  %v1928_v34 = vld [vmem:[#allocation17_spill] sm:$0xff] }
 0x102   :  { %v1841_v13 = vpack.c.bf16 %v959_v15, %v958_v23 }
 0x103   :  { %v976_v32 = vpack.c.bf16 %v919_v29, %v918_v19  ;;  %v1844_v62 = vpack.c.bf16 %v941_v41, %v940_v55  ;;  %v974_v3 = vpack.c.bf16 %v915_v58, %v914_v50  ;;  %v946_v55 = vmax.f32 %v850_v10, 0.0  ;;  %v1009_v29 = vld [vmem:[#allocation1] sm:$0xff]  ;;  %v1932_v10 = vld [vmem:[#allocation6_spill] sm:$0xff] }
 0x104   :  { %v851_v56 = vpop.f32.mrf.mxu2 }
 0x105   :  { %v896_v36 = vpop.f32.mrf.mxu3  ;;  %1017 = vmatpush.bf16.msrb.mxu1 %v976_v32  ;;  %v852_v32 = vadd.f32 %v851_v56, %v1804_v1 }
 0x106   :  { %v1848_v25 = vpop.f32.mrf.mxu0  ;;  %v324_v41 = vpop.permute.xlu0 %323  ;;  %v897_v5 = vadd.f32 %v896_v36, %v1782_v30  ;;  %v892_v30 = vadd.f32 %v1824_v63, %v1822_v9  ;;  %v885_v9 = vadd.f32 %v1800_v27, %v1828_v51  ;;  %v1930_v51 = vld [vmem:[#allocation15_spill] sm:$0xff] }
 0x107   :  { %v947_v45 = vmax.f32 %v852_v32, 0.0  ;;  %v830_v36 = vadd.f32 %v1928_v34, %v324_v41  ;;  %v1931_v41 = vld [vmem:[#allocation19_spill] sm:$0xff] }
 0x109   :  { %1018 = vmatpush.bf16.msrb.mxu1 %v975_v6 }
 0x10c   :  { %v854_v12 = vpop.f32.mrf.mxu2 }
 0x10d   :  { %v899_v14 = vpop.f32.mrf.mxu3  ;;  %1019 = vmatpush.bf16.msrb.mxu1 %v974_v3  ;;  %v855_v43 = vadd.f32 %v854_v12, %v1777_v42  ;;  %v329_v42 = vpop.permute.xlu1 %328 }
 0x10e   :  { %v1850_v22 = vpop.f32.mrf.mxu0 }
 0x10f   :  { %v948_v8 = vmax.f32 %v855_v43, 0.0  ;;  %v1929_v43 = vld [vmem:[#allocation12_spill] sm:$0xff] }
 0x111   :  { %1020 = vmatpush.bf16.msrb.mxu1 %v1784_v11  ;;  %v847_v11 = vadd.f32 %v846_v2, %v1812_v40  ;;  %v419_v40 = vpop.permute.xlu0 %418  ;;  %v990_v2 = vpack.c.bf16 %v947_v45, %v946_v55 }
 0x112   :  { %v877_v32 = vadd.f32 %v1931_v41, %v419_v40  ;;  %v1938_v40 = vld [vmem:[#allocation11_spill] sm:$0xff] }
 0x113   :  { %v945_v15 = vmax.f32 %v847_v11, 0.0 }
 0x114   :  { %v856_v4 = vpop.f32.mrf.mxu2 }
 0x115   :  { %v857_v35 = vadd.f32 %v856_v4, %v1754_v61  ;;  %v901_v28 = vpop.f32.mrf.mxu3  ;;  %1021 = vmatpush.bf16.msrb.mxu1 %v1761_v16  ;;  %v900_v61 = vadd.f32 %v899_v14, %v1788_v44  ;;  %v845_v16 = vadd.f32 %v1816_v46, %v1814_v0  ;;  %v895_v44 = vadd.f32 %v1832_v21, %v1802_v37  ;;  %v314_v7 = vpop.permute.xlu1 %313 }
 0x116   :  { %v1857_v49 = vpop.f32.mrf.mxu0  ;;  %v902_v39 = vadd.f32 %v901_v28, %v1786_v53  ;;  %v840_v53 = vadd.f32 %v1798_v24, %v1820_v59  ;;  %v842_v0 = vadd.f32 %v1808_v54, %v1806_v47  ;;  %v965_v24 = vmax.f32 %v897_v5, 0.0 }
 0x117   :  { %v949_v33 = vmax.f32 %v857_v35, 0.0  ;;  %v966_v23 = vmax.f32 %v900_v61, 0.0  ;;  %v944_v46 = vmax.f32 %v845_v16, 0.0  ;;  %v890_v21 = vadd.f32 %v1818_v57, %v1796_v60  ;;  %v1935_v16 = vld [vmem:[#allocation14_spill] sm:$0xff] }
 0x118   :  { %v967_v31 = vmax.f32 %v902_v39, 0.0  ;;  %v942_v19 = vmax.f32 %v840_v53, 0.0  ;;  %v964_v37 = vmax.f32 %v895_v44, 0.0  ;;  %v943_v56 = vmax.f32 %v842_v0, 0.0  ;;  %v1933_v39 = vld [vmem:[#allocation18_spill] sm:$0xff]  ;;  %v1937_v53 = vld [vmem:[#allocation13_spill] sm:$0xff] }
 0x119   :  { %1022 = vmatpush.bf16.msrb.mxu1 %v1747_v48  ;;  %v991_v1 = vpack.c.bf16 %v949_v33, %v948_v8  ;;  %v414_v48 = vpop.permute.xlu2 %413  ;;  %v963_v47 = vmax.f32 %v892_v30, 0.0  ;;  %v887_v54 = vadd.f32 %v1810_v17, %v1826_v38  ;;  %v962_v60 = vmax.f32 %v890_v21, 0.0  ;;  %v404_v6 = vpop.permute.xlu0 %403 }
 0x11a   :  { %v1000_v59 = vpack.c.bf16 %v967_v31, %v966_v23  ;;  %v999_v63 = vpack.c.bf16 %v965_v24, %v964_v37  ;;  %v988_v58 = vpack.c.bf16 %v943_v56, %v942_v19  ;;  %v960_v14 = vmax.f32 %v885_v9, 0.0  ;;  %v1940_v56 = vld [vmem:[#allocation9_spill] sm:$0xff]  ;;  %v1942_v9 = vld [vmem:[#allocation7_spill] sm:$0xff] }
 0x11b   :  { %1044 = vmatpush.bf16.msrb.mxu3 %v991_v1  ;;  %v998_v50 = vpack.c.bf16 %v963_v47, %v962_v60  ;;  %v961_v12 = vmax.f32 %v887_v54, 0.0  ;;  %v938_v38 = vmax.f32 %v830_v36, 0.0  ;;  %v825_v27 = vadd.f32 %v1929_v43, %v314_v7  ;;  %v1934_v1 = vld [vmem:[#allocation10_spill] sm:$0xff]  ;;  %v1941_v7 = vld [vmem:[#allocation8_spill] sm:$0xff] }
 0x11c   :  { %v875_v11 = vadd.f32 %v1933_v39, %v414_v48  ;;  %v957_v5 = vmax.f32 %v877_v32, 0.0  ;;  %v785_v47 = vadd.f32 %v1848_v25, %v1941_v7  ;;  %v1012_v25 = vld [vmem:[#allocation1 + $0x1b] sm:$0xff] }
 0x11d   :  { %1023 = vmatpush.bf16.msrb.mxu1 %v1719_v18  ;;  %v989_v18 = vpack.c.bf16 %v945_v15, %v944_v46  ;;  %v936_v35 = vmax.f32 %v825_v27, 0.0  ;;  %v409_v28 = vpop.permute.xlu1 %408  ;;  %v870_v15 = vadd.f32 %v1937_v53, %v404_v6  ;;  %v1010_v6 = vld [vmem:[#allocation1 + $0x9] sm:$0xff] }
 0x11e   :  { %v791_v20 = vpop.f32.mrf.mxu0  ;;  %v956_v46 = vmax.f32 %v875_v11, 0.0  ;;  %v920_v36 = vmax.f32 %v785_v47, 0.0 }
 0x11f   :  { %1045 = vmatpush.bf16.msrb.mxu3 %v990_v2  ;;  %v792_v61 = vadd.f32 %v791_v20, %v1934_v1  ;;  %v790_v2 = vadd.f32 %v1857_v49, %v1938_v40  ;;  %v1939_v20 = vld [vmem:[#allocation5_spill] sm:$0xff]  ;;  %v954_v37 = vmax.f32 %v870_v15, 0.0 }
 0x120   :  { %v787_v24 = vadd.f32 %v1850_v22, %v1939_v20 }
 0x121   :  { %1024 = vmatpush.bf16.msrb.mxu1 %v1671_v52  ;;  %v832_v52 = vadd.f32 %v1766_v26, %v329_v42  ;;  %v319_v3 = vpop.permute.xlu2 %318  ;;  %v997_v26 = vpack.c.bf16 %v961_v12, %v960_v14  ;;  %v399_v44 = vpop.permute.xlu0 %398  ;;  %v922_v54 = vmax.f32 %v790_v2, 0.0 }
 0x122   :  { %v827_v4 = vadd.f32 %v1930_v51, %v319_v3  ;;  %v867_v49 = vadd.f32 %v1940_v56, %v399_v44 }
 0x123   :  { %1046 = vmatpush.bf16.msrb.mxu3 %v989_v18  ;;  %v939_v17 = vmax.f32 %v832_v52, 0.0  ;;  %v1011_v18 = vld [vmem:[#allocation1 + $0x12] sm:$0xff] }
 0x124   :  { %1025 = vmatmul.bf16.vlgmr.msrb.gmra.mxu1 %v1009_v29  ;;  %v937_v42 = vmax.f32 %v827_v4, 0.0  ;;  %v995_v29 = vpack.c.bf16 %v957_v5, %v956_v46  ;;  %v953_v34 = vmax.f32 %v867_v49, 0.0 }
 0x125   :  { %1056 = vmatpush.bf16.msra.mxu1 %v1000_v59  ;;  %v986_v33 = vpack.c.bf16 %v939_v17, %v938_v38  ;;  %v923_v59 = vmax.f32 %v792_v61, 0.0  ;;  %v1005_v17 = vpop.permute.xlu1 %1004 }
 0x126   :  { %v794_v57 = vpop.f32.mrf.mxu0  ;;  %v985_v48 = vpack.c.bf16 %v937_v42, %v936_v35 }
 0x127   :  { %1047 = vmatpush.bf16.msrb.mxu3 %v988_v58  ;;  %v795_v8 = vadd.f32 %v794_v57, %v1932_v10  ;;  %v978_v22 = vpack.c.bf16 %v923_v59, %v922_v54 }
 0x129   :  { %1057 = vmatpush.bf16.msra.mxu1 %v999_v63  ;;  %v924_v23 = vmax.f32 %v795_v8, 0.0  ;;  %v394_v30 = vpop.permute.xlu2 %393  ;;  %v921_v63 = vmax.f32 %v787_v24, 0.0 }
 0x12b   :  { %1048 = vmatpush.bf16.msrb.mxu3 %v1844_v62  ;;  %v1936_v62 = vld [vmem:[#allocation16_spill] sm:$0xff]  ;;  %v977_v60 = vpack.c.bf16 %v921_v63, %v920_v36 }
 0x12c   :  { %v872_v31 = vadd.f32 %v1936_v62, %v409_v28 }
 0x12d   :  { %1058 = vmatpush.bf16.msra.mxu1 %v998_v50 }
 0x12e   :  { %v796_v45 = vpop.f32.mrf.mxu0  ;;  %v955_v21 = vmax.f32 %v872_v31, 0.0 }
 0x12f   :  { %v797_v55 = vadd.f32 %v796_v45, %v1935_v16  ;;  %1049 = vmatpush.bf16.msrb.mxu3 %v986_v33 }
 0x130   :  { %v994_v52 = vpack.c.bf16 %v955_v21, %v954_v37 }
 0x131   :  { %1059 = vmatpush.bf16.msra.mxu1 %v997_v26  ;;  %v925_v0 = vmax.f32 %v797_v55, 0.0 }
 0x133   :  { %1050 = vmatpush.bf16.msrb.mxu3 %v985_v48  ;;  %v979_v19 = vpack.c.bf16 %v925_v0, %v924_v23 }
 0x135   :  { %1060 = vmatpush.bf16.msra.mxu1 %v1841_v13  ;;  %1035 = vmatpush.bf16.msrb.mxu2 %v979_v19  ;;  %v865_v13 = vadd.f32 %v1942_v9, %v394_v30 }
 0x136   :  { %1051 = vmatmul.bf16.vlgmr.msrb.gmra.mxu3 %v1011_v18 }
 0x137   :  { %v952_v58 = vmax.f32 %v865_v13, 0.0 }
 0x139   :  { %1061 = vmatpush.bf16.msra.mxu1 %v995_v29  ;;  %1036 = vmatpush.bf16.msrb.mxu2 %v978_v22  ;;  %v993_v57 = vpack.c.bf16 %v953_v34, %v952_v58 }
 0x13d   :  { %1062 = vmatpush.bf16.msra.mxu1 %v994_v52  ;;  %1037 = vmatpush.bf16.msrb.mxu2 %v977_v60 }
 0x140   :  { %1038 = vmatmul.bf16.vlgmr.msrb.gmra.mxu2 %v1010_v6 }
 0x141   :  { %1063 = vmatpush.bf16.msra.mxu1 %v993_v57 }
 0x144   :  { %1064 = vmatmul.bf16.vlgmr.msra.gmra.mxu1 %v1012_v25 }
 0x1a1   :  { %v1026_v50 = vpop.f32.mrf.mxu1 }
 0x1a2   :  { %v1027_v43 = vadd.f32 %v1026_v50, %v1005_v17 }
 0x1a9   :  { %v1028_v3 = vpop.f32.mrf.mxu1 }
 0x1b9   :  { %v1052_v12 = vpop.f32.mrf.mxu3 }
 0x1c1   :  { %v1065_v14 = vpop.f32.mrf.mxu1  ;;  %v1054_v38 = vpop.f32.mrf.mxu3 }
 0x1c3   :  { %v1039_v27 = vpop.f32.mrf.mxu2 }
 0x1c4   :  { %v1040_v51 = vadd.f32 %v1039_v27, %v1027_v43 }
 0x1c6   :  { %v1053_v4 = vadd.f32 %v1052_v12, %v1040_v51 }
 0x1c8   :  { %v1066_v41 = vadd.f32 %v1065_v14, %v1053_v4 }
 0x1c9   :  { %v1067_v26 = vpop.f32.mrf.mxu1 }
 0x1ca   :  { %v1069_v32 = vmax.f32 %v1066_v41, 0.0 }
 0x1cb   :  { %v1041_v35 = vpop.f32.mrf.mxu2 }
 0x1cc   :  { %1070 = vst [vmem:[#allocation2] sm:$0x3] %v1069_v32 }
 0x1cd   :  { %1081 = dma.vmem_to_hbm [thread:$0]  %s1077_s4, 32, %s1079_s8, [#allocation3]  }
 0x1ce   :  { %1312 = dma.done.wait [#allocation3], 32  }
 0x1cf   :  { %1313 = vsyncadd [#allocation3], 4294967264 }
 0x1d0   :  { %1086 = vsyncpa [#allocation3], 1 }

</bundles_post_ra>
